<compile_context>
chip_gen: v7x
topology: tpu7x:2x2x1
jax: 0.10.0
libtpu: 0.0.40
codegen_flags: <defaults>
</compile_context>

<pallas_src>
import functools

import jax
import jax.numpy as jnp
from jax.experimental import pallas as pl
from jax.experimental.pallas import tpu as pltpu

# CTRNN constants: dt=None => alpha = 1 (matches the PyTorch module default).
ALPHA = 1.0


def _make_ctrnn_kernel(S, B, alpha):
    """Build a kernel closure for static seq_len S, batch B and CTRNN alpha."""
    if not isinstance(alpha, (int, float)):
        raise TypeError("alpha must be a static Python number (got %r)" % (alpha,))
    alpha = float(alpha)
    one_minus_alpha = 1.0 - alpha

    def kernel(x_ref, wih_ref, whh_ref, wfc_ref, out_ref, act_ref):
        # x_ref   : (S*B, I)   VMEM resident (whole sequence, ~1 KiB)
        # act_ref : (S*B, H)   output slab, written ONCE (single dense store)
        # out_ref : (S*B, O)   written once (single dense matmul + store)
        w_hh = whh_ref[...]                                   # (H, H) resident
        H = whh_ref.shape[0]

        # Hoisted input projection: one batched (S*B, I) @ (I, H) matmul off
        # the serial h-dependency chain.
        pre_all = jnp.dot(
            x_ref[...], wih_ref[...], preferred_element_type=jnp.float32
        )                                                     # (S*B, H)

        h = jnp.zeros((B, H), jnp.float32)
        acts = []
        # S is small & static -> trace-time unrolled recurrence (no grid /
        # fori_loop overhead). Only ONE dependent matmul per step.
        for t in range(S):
            pre = pre_all[t * B:(t + 1) * B, :] + jnp.dot(
                h, w_hh, preferred_element_type=jnp.float32
            )
            if one_minus_alpha == 0.0:
                # alpha == 1: leak term is identically zero — drop it.
                h = jnp.maximum(pre, 0.0)
            else:
                h = jnp.maximum(h * one_minus_alpha + pre * alpha, 0.0)
            acts.append(h)

        # Single dense (16-sublane) store of all activations.
        act = jnp.concatenate(acts, axis=0)                   # (S*B, H)
        act_ref[...] = act.astype(act_ref.dtype)

        # Deferred fc readout fed from the in-register value (no RAW on the
        # VMEM store): one (S*B, H) @ (H, O) matmul + one dense store.
        out_ref[...] = jnp.dot(
            act, wfc_ref[...], preferred_element_type=jnp.float32
        ).astype(out_ref.dtype)

    return kernel


@functools.partial(jax.jit, static_argnames=("alpha",))
def ctrnn_net_forward(x, w_ih, w_hh, w_fc, alpha=ALPHA):
    """x: (S, B, I); weights in PyTorch layout (out_features, in_features)."""
    S, B, I = x.shape
    H = w_ih.shape[0]
    O = w_fc.shape[0]

    # Glue (fused under this jit): flatten time*batch into one row axis and
    # pre-transpose the weights for row-major matmuls in the kernel.
    x_flat = x.reshape(S * B, I).astype(jnp.float32)   # (S*B, I)
    w_ih_t = w_ih.T.astype(jnp.float32)                # (I, H)
    w_hh_t = w_hh.T.astype(jnp.float32)                # (H, H)
    w_fc_t = w_fc.T.astype(jnp.float32)                # (H, O)

    kernel = _make_ctrnn_kernel(S, B, alpha)

    out_flat, act_flat = pl.pallas_call(
        kernel,
        out_shape=(
            jax.ShapeDtypeStruct((S * B, O), jnp.float32),
            jax.ShapeDtypeStruct((S * B, H), jnp.float32),
        ),
        # No grid: single invocation, everything VMEM resident.
        in_specs=[
            pl.BlockSpec(memory_space=pltpu.MemorySpace.VMEM),   # x_flat
            pl.BlockSpec(memory_space=pltpu.MemorySpace.VMEM),   # w_ih_t
            pl.BlockSpec(memory_space=pltpu.MemorySpace.VMEM),   # w_hh_t
            pl.BlockSpec(memory_space=pltpu.MemorySpace.VMEM),   # w_fc_t
        ],
        out_specs=(
            pl.BlockSpec(memory_space=pltpu.MemorySpace.VMEM),   # out slab
            pl.BlockSpec(memory_space=pltpu.MemorySpace.VMEM),   # activity slab
        ),
    )(x_flat, w_ih_t, w_hh_t, w_fc_t)

    return out_flat.reshape(S, B, O), act_flat.reshape(S, B, H)


def _reference(x, w_ih, w_hh, w_fc, alpha=ALPHA):
    """Pure-JAX reference of the PyTorch forward (for sanity checking)."""
    S, B, I = x.shape
    H = w_ih.shape[0]
    one_minus_alpha = 1.0 - alpha
    h = jnp.zeros((B, H), jnp.float32)
    acts = []
    for t in range(S):
        pre = x[t] @ w_ih.T + h @ w_hh.T
        # Matches the PyTorch module: relu(h*(1-a) + a*pre).
        h = jnp.maximum(h * one_minus_alpha + pre * alpha, 0.0)
        acts.append(h)
    act = jnp.stack(acts, axis=0)
    out = act @ w_fc.T
    return out, act


if __name__ == "__main__":
    # Small shapes consistent with the module: seq=8, batch=2, input=4,
    # hidden=32, output=4.
    S, B, I, H, O = 8, 2, 4, 32, 4

    key = jax.random.PRNGKey(0)
    kx, k1, k2, k3 = jax.random.split(key, 4)

    x = jax.random.normal(kx, (S, B, I), dtype=jnp.float32)
    # Deterministic parameter init (Kaiming-uniform-ish scale, like nn.Linear)
    w_ih = jax.random.uniform(k1, (H, I), minval=-1.0, maxval=1.0) / jnp.sqrt(I)
    w_hh = jax.random.uniform(k2, (H, H), minval=-1.0, maxval=1.0) / jnp.sqrt(H)
    w_fc = jax.random.uniform(k3, (O, H), minval=-1.0, maxval=1.0) / jnp.sqrt(H)

    out, act = ctrnn_net_forward(x, w_ih, w_hh, w_fc)
    jax.block_until_ready((out, act))

    out_ref, act_ref = _reference(x, w_ih, w_hh, w_fc)
    assert out.shape == (S, B, O) and act.shape == (S, B, H)
    assert jnp.allclose(out, out_ref, atol=1e-5, rtol=1e-5)
    assert jnp.allclose(act, act_ref, atol=1e-5, rtol=1e-5)

    print("KERNEL_OK")
</pallas_src>

<mosaic_0001>
module attributes {stable_mosaic.version = 11 : i64} {
  func.func @kernel(%arg0: memref<16x4xf32, #tpu.memory_space<vmem>>, %arg1: memref<4x32xf32, #tpu.memory_space<vmem>>, %arg2: memref<32x32xf32, #tpu.memory_space<vmem>>, %arg3: memref<32x4xf32, #tpu.memory_space<vmem>>, %arg4: memref<16x4xf32, #tpu.memory_space<vmem>>, %arg5: memref<16x32xf32, #tpu.memory_space<vmem>>) attributes {dimension_semantics = [], scalar_prefetch = 0 : i64, scratch_operands = 0 : i64, tpu.core_type = #tpu.core_type<tc>} {
    %c0 = arith.constant 0 : index
    %c0_0 = arith.constant 0 : index
    %0 = vector.load %arg2[%c0, %c0_0] : memref<32x32xf32, #tpu.memory_space<vmem>>, vector<32x32xf32>
    %c0_1 = arith.constant 0 : index
    %c0_2 = arith.constant 0 : index
    %1 = vector.load %arg0[%c0_1, %c0_2] : memref<16x4xf32, #tpu.memory_space<vmem>>, vector<16x4xf32>
    %c0_3 = arith.constant 0 : index
    %c0_4 = arith.constant 0 : index
    %2 = vector.load %arg1[%c0_3, %c0_4] : memref<4x32xf32, #tpu.memory_space<vmem>>, vector<4x32xf32>
    %cst = arith.constant dense<0.000000e+00> : vector<16x32xf32>
    %3 = tpu.matmul %1, %2, %cst {dimension_numbers = #tpu.dot_dimension_numbers<[1], [0], [0], [1], [0, 0, 1, 1], [], []>} : vector<16x4xf32>, vector<4x32xf32>, vector<16x32xf32> -> vector<16x32xf32>
    %cst_5 = arith.constant 0.000000e+00 : f32
    %4 = vector.broadcast %cst_5 : f32 to vector<2x32xf32>
    %5 = vector.extract_strided_slice %3 {offsets = [0, 0], sizes = [2, 32], strides = [1, 1]} : vector<16x32xf32> to vector<2x32xf32>
    %cst_6 = arith.constant dense<0.000000e+00> : vector<2x32xf32>
    %6 = tpu.matmul %4, %0, %cst_6 {dimension_numbers = #tpu.dot_dimension_numbers<[1], [0], [0], [1], [0, 0, 1, 1], [], []>} : vector<2x32xf32>, vector<32x32xf32>, vector<2x32xf32> -> vector<2x32xf32>
    %7 = arith.addf %5, %6 : vector<2x32xf32>
    %cst_7 = arith.constant 0.000000e+00 : f32
    %8 = vector.broadcast %cst_7 : f32 to vector<2x32xf32>
    %9 = arith.maximumf %7, %8 : vector<2x32xf32>
    %10 = vector.extract_strided_slice %3 {offsets = [2, 0], sizes = [2, 32], strides = [1, 1]} : vector<16x32xf32> to vector<2x32xf32>
    %cst_8 = arith.constant dense<0.000000e+00> : vector<2x32xf32>
    %11 = tpu.matmul %9, %0, %cst_8 {dimension_numbers = #tpu.dot_dimension_numbers<[1], [0], [0], [1], [0, 0, 1, 1], [], []>} : vector<2x32xf32>, vector<32x32xf32>, vector<2x32xf32> -> vector<2x32xf32>
    %12 = arith.addf %10, %11 : vector<2x32xf32>
    %cst_9 = arith.constant 0.000000e+00 : f32
    %13 = vector.broadcast %cst_9 : f32 to vector<2x32xf32>
    %14 = arith.maximumf %12, %13 : vector<2x32xf32>
    %15 = vector.extract_strided_slice %3 {offsets = [4, 0], sizes = [2, 32], strides = [1, 1]} : vector<16x32xf32> to vector<2x32xf32>
    %cst_10 = arith.constant dense<0.000000e+00> : vector<2x32xf32>
    %16 = tpu.matmul %14, %0, %cst_10 {dimension_numbers = #tpu.dot_dimension_numbers<[1], [0], [0], [1], [0, 0, 1, 1], [], []>} : vector<2x32xf32>, vector<32x32xf32>, vector<2x32xf32> -> vector<2x32xf32>
    %17 = arith.addf %15, %16 : vector<2x32xf32>
    %cst_11 = arith.constant 0.000000e+00 : f32
    %18 = vector.broadcast %cst_11 : f32 to vector<2x32xf32>
    %19 = arith.maximumf %17, %18 : vector<2x32xf32>
    %20 = vector.extract_strided_slice %3 {offsets = [6, 0], sizes = [2, 32], strides = [1, 1]} : vector<16x32xf32> to vector<2x32xf32>
    %cst_12 = arith.constant dense<0.000000e+00> : vector<2x32xf32>
    %21 = tpu.matmul %19, %0, %cst_12 {dimension_numbers = #tpu.dot_dimension_numbers<[1], [0], [0], [1], [0, 0, 1, 1], [], []>} : vector<2x32xf32>, vector<32x32xf32>, vector<2x32xf32> -> vector<2x32xf32>
    %22 = arith.addf %20, %21 : vector<2x32xf32>
    %cst_13 = arith.constant 0.000000e+00 : f32
    %23 = vector.broadcast %cst_13 : f32 to vector<2x32xf32>
    %24 = arith.maximumf %22, %23 : vector<2x32xf32>
    %25 = vector.extract_strided_slice %3 {offsets = [8, 0], sizes = [2, 32], strides = [1, 1]} : vector<16x32xf32> to vector<2x32xf32>
    %cst_14 = arith.constant dense<0.000000e+00> : vector<2x32xf32>
    %26 = tpu.matmul %24, %0, %cst_14 {dimension_numbers = #tpu.dot_dimension_numbers<[1], [0], [0], [1], [0, 0, 1, 1], [], []>} : vector<2x32xf32>, vector<32x32xf32>, vector<2x32xf32> -> vector<2x32xf32>
    %27 = arith.addf %25, %26 : vector<2x32xf32>
    %cst_15 = arith.constant 0.000000e+00 : f32
    %28 = vector.broadcast %cst_15 : f32 to vector<2x32xf32>
    %29 = arith.maximumf %27, %28 : vector<2x32xf32>
    %30 = vector.extract_strided_slice %3 {offsets = [10, 0], sizes = [2, 32], strides = [1, 1]} : vector<16x32xf32> to vector<2x32xf32>
    %cst_16 = arith.constant dense<0.000000e+00> : vector<2x32xf32>
    %31 = tpu.matmul %29, %0, %cst_16 {dimension_numbers = #tpu.dot_dimension_numbers<[1], [0], [0], [1], [0, 0, 1, 1], [], []>} : vector<2x32xf32>, vector<32x32xf32>, vector<2x32xf32> -> vector<2x32xf32>
    %32 = arith.addf %30, %31 : vector<2x32xf32>
    %cst_17 = arith.constant 0.000000e+00 : f32
    %33 = vector.broadcast %cst_17 : f32 to vector<2x32xf32>
    %34 = arith.maximumf %32, %33 : vector<2x32xf32>
    %35 = vector.extract_strided_slice %3 {offsets = [12, 0], sizes = [2, 32], strides = [1, 1]} : vector<16x32xf32> to vector<2x32xf32>
    %cst_18 = arith.constant dense<0.000000e+00> : vector<2x32xf32>
    %36 = tpu.matmul %34, %0, %cst_18 {dimension_numbers = #tpu.dot_dimension_numbers<[1], [0], [0], [1], [0, 0, 1, 1], [], []>} : vector<2x32xf32>, vector<32x32xf32>, vector<2x32xf32> -> vector<2x32xf32>
    %37 = arith.addf %35, %36 : vector<2x32xf32>
    %cst_19 = arith.constant 0.000000e+00 : f32
    %38 = vector.broadcast %cst_19 : f32 to vector<2x32xf32>
    %39 = arith.maximumf %37, %38 : vector<2x32xf32>
    %40 = vector.extract_strided_slice %3 {offsets = [14, 0], sizes = [2, 32], strides = [1, 1]} : vector<16x32xf32> to vector<2x32xf32>
    %cst_20 = arith.constant dense<0.000000e+00> : vector<2x32xf32>
    %41 = tpu.matmul %39, %0, %cst_20 {dimension_numbers = #tpu.dot_dimension_numbers<[1], [0], [0], [1], [0, 0, 1, 1], [], []>} : vector<2x32xf32>, vector<32x32xf32>, vector<2x32xf32> -> vector<2x32xf32>
    %42 = arith.addf %40, %41 : vector<2x32xf32>
    %cst_21 = arith.constant 0.000000e+00 : f32
    %43 = vector.broadcast %cst_21 : f32 to vector<2x32xf32>
    %44 = arith.maximumf %42, %43 : vector<2x32xf32>
    %45 = tpu.concatenate %9, %14, %19, %24, %29, %34, %39, %44 in 0 : vector<2x32xf32>, vector<2x32xf32>, vector<2x32xf32>, vector<2x32xf32>, vector<2x32xf32>, vector<2x32xf32>, vector<2x32xf32>, vector<2x32xf32> -> vector<16x32xf32>
    %c0_22 = arith.constant 0 : index
    %c0_23 = arith.constant 0 : index
    %46 = vector.load %arg5[%c0_22, %c0_23] : memref<16x32xf32, #tpu.memory_space<vmem>>, vector<16x32xf32>
    tpu.vector_store %arg5[%c0_22, %c0_23], %45 {strides = array<i32>} : memref<16x32xf32, #tpu.memory_space<vmem>>, vector<16x32xf32>,
    %c0_24 = arith.constant 0 : index
    %c0_25 = arith.constant 0 : index
    %47 = vector.load %arg3[%c0_24, %c0_25] : memref<32x4xf32, #tpu.memory_space<vmem>>, vector<32x4xf32>
    %cst_26 = arith.constant dense<0.000000e+00> : vector<16x4xf32>
    %48 = tpu.matmul %45, %47, %cst_26 {dimension_numbers = #tpu.dot_dimension_numbers<[1], [0], [0], [1], [0, 0, 1, 1], [], []>} : vector<16x32xf32>, vector<32x4xf32>, vector<16x4xf32> -> vector<16x4xf32>
    %c0_27 = arith.constant 0 : index
    %c0_28 = arith.constant 0 : index
    %49 = vector.load %arg4[%c0_27, %c0_28] : memref<16x4xf32, #tpu.memory_space<vmem>>, vector<16x4xf32>
    tpu.vector_store %arg4[%c0_27, %c0_28], %48 {strides = array<i32>} : memref<16x4xf32, #tpu.memory_space<vmem>>, vector<16x4xf32>,
    return
  }
}

</mosaic_0001>

<bundles_post_ra>
// kernel: ctrnn_net_forward.1
= control target key start
LH: loop header
LB: loop body
LE: loop exit
PB: predicated region body
PF: predicated region fallthrough
CT: control target
= control target key end

     0   :  { %vm34_vm0 = vcmask 1043456   ;;  %v1105_v3 = vmov 0.0|0.0   ;;  %vm27_vm1 = vcmask 31744   ;;  %s1274_s0 = inlined_call_operand.vmem [shape: f32[16,4], index: 0, kind: input, shape index: {}]   ;;  %s1275_s1 = inlined_call_operand.vmem [shape: f32[4,32], index: 1, kind: input, shape index: {}]   ;;  %s1276_s2 = inlined_call_operand.vmem [shape: f32[32,32], index: 2, kind: input, shape index: {}]   ;;  %s1277_s3 = inlined_call_operand.vmem [shape: f32[32,4], index: 3, kind: input, shape index: {}]   ;;  %s1278_s4 = inlined_call_operand.vmem [shape: f32[16,4], index: 4, kind: output, shape index: {0}]   ;;  %s1279_s5 = inlined_call_operand.hbm [shape: f32[16,32], index: 5, kind: output, shape index: {1}]  }
   0x1   :  { %v20_v0 = vld [vmem:[%s1276_s2] sm:$0xff]  ;;  %v21_v1 = vld [vmem:[%s1276_s2 + $0x8] sm:$0xff]  ;;  %1019 = vmatprep.subr.bf16.mxu1 %v1105_v3  ;;  %v22_v6 = vld [vmem:[%s1276_s2 + $0x10] sm:$0xff] }
   0x2   :  { %v26_v2 = vld [vmem:[%s1275_s1] sm:$0xf]  ;;  %v1151_v4 = vpack.c.bf16 %v21_v1, %v20_v0  ;;  %v23_v7 = vld [vmem:[%s1276_s2 + $0x18] sm:$0xff]  ;;  %v25_v8 = vld [vmem:[%s1274_s0 + $0x8] sm:$0xff] }
   0x3   :  { %915 = vmatprep.subr.msk.mxu0 %vm34_vm0, %v26_v2  ;;  %v24_v5 = vld [vmem:[%s1274_s0] sm:$0xff] }
   0x4   :  { %916 = vmatpush3.msk.msra.mxu0 %vm34_vm0, %v26_v2  ;;  %917 = vmatprep.mubr.msk.f32.mxu0 %vm27_vm1, %v24_v5 }
   0x5   :  { %11 = vsyncpa [#allocation3], 0  ;;  %1021 = vmatpush3.bf16.msra.mxu1 %v1151_v4  ;;  %v1169_v9 = vpack.c.bf16 %v23_v7, %v22_v6  ;;  %918 = vmatmul.mubr.msk.f32.vlgmr.msra.gmra.mrb[0].mxu0 %vm27_vm1, %v25_v8  ;;  %vm1106_vm2 = vmmov 0   ;;  %v1107_v10 = vmov 0.0   ;;  %vm113_vm3 = vcmask 261120   ;;  %v747_v56 = vld [vmem:[%s1277_s3] sm:$0xff] }
   0x6   :  { %1022 = vmatprep.subr.bf16.mxu1 %v1105_v3  ;;  %928 = vmatprep.mubr.msk.f32.mxu1 %vm1106_vm2, %v1107_v10  ;;  %vm737_vm4 = vcmask 1041408   ;;  %vm740_vm5 = vcmask 1045504   ;;  %v748_v57 = vld [vmem:[%s1277_s3 + $0x8] sm:$0xff]  ;;  %v749_v59 = vld [vmem:[%s1277_s3 + $0x10] sm:$0xff]  ;;  %v750_v60 = vld [vmem:[%s1277_s3 + $0x18] sm:$0xff]  ;;  %s1108_s12 = smov [#allocation2]  }
   0x7   :  { %1025 = vmatprep.subr.bf16.mxu0 %v1105_v3  ;;  %939 = vmatprep.mubr.msk.f32.mxu0 %vm1106_vm2, %v1107_v10  ;;  %v1067_v58 = vpack.c.bf16 %v748_v57, %v747_v56  ;;  %v1071_v61 = vpack.c.bf16 %v750_v60, %v749_v59  ;;  %s841_s13 = sshll.u32 %s1108_s12, 4  ;;  %s842_s13 = int_to_ptr.vmem [resolvable:$true] %s841_s13 }
   0x8   :  { %1027 = vmatpush3.bf16.msra.mxu0 %v1151_v4  ;;  %s1081_s14 = scalar_lea.vmem %s842_s13, 256  ;;  %p1086_p1 = scmp.lt.s32.totalorder %s842_s13, %s842_s13 }
   0x9   :  { %1024 = vmatpush3.bf16.msra.mxu1 %v1169_v9  ;;  %1028 = vmatprep.subr.bf16.mxu0 %v1105_v3  ;;  %p1082_p0 = scmp.ne.s32.totalorder %s842_s13, %s1081_s14  ;;  %p1087_p2 = scmp.lt.s32.totalorder %s1081_s14, %s1081_s14 }
   0xa   :  { %1031 = vmatprep.subr.bf16.mxu1 %v1105_v3 }
   0xb   :  { %p1088_p3 = por %p1087_p2, %p1086_p1 }
   0xc   :  { %929 = vmatmul.mubr.f32.vlgmr.msra.gmra.mrb[0].mxu1 %v1107_v10  ;;  %1030 = vmatpush3.bf16.msra.mxu0 %v1169_v9 }
   0xd   :  { %1033 = vmatpush3.bf16.msra.mxu1 %v1151_v4  ;;  %950 = vmatprep.mubr.msk.f32.mxu1 %vm1106_vm2, %v1107_v10  ;;  %p1089_p4 = pnand %p1088_p3, %p1082_p0 }
   0xe   :  { %1034 = vmatprep.subr.bf16.mxu1 %v1105_v3  ;;  %1037 = vmatprep.subr.bf16.mxu0 %v1105_v3 }
  0x11   :  { %1036 = vmatpush3.bf16.msra.mxu1 %v1169_v9 }
  0x12   :  { %1043 = vmatprep.subr.bf16.mxu1 %v1105_v3 }
  0xd8   :  { %v1191_v11 = vpop.f32.mrb[0].mxu0 }
  0xd9   :  { %v104_v12 = vpop.f32.mrb[1].mxu0 }
  0xdf   :  { %v183_v13 = vpop.f32.mrb[0].mxu1 }
  0xe0   :  { %v187_v14 = vadd.f32 %v183_v13, %v104_v12  ;;  %v930_v15 = vpop.f32.mrb[1].mxu1 }
  0xe2   :  { %v188_v16 = vmax.f32 %v187_v14, 0.0 }
  0xe4   :  { %940 = vmatmul.mubr.msk.f32.vlgmr.msra.gmra.mrb[2].mxu0 %vm113_vm3, %v188_v16 }
  0xe5   :  { %1039 = vmatpush3.bf16.msra.mxu0 %v1151_v4  ;;  %961 = vmatprep.mubr.msk.f32.mxu0 %vm1106_vm2, %v1107_v10 }
  0xe6   :  { %1040 = vmatprep.subr.bf16.mxu0 %v1105_v3 }
  0xe9   :  { %1042 = vmatpush3.bf16.msra.mxu0 %v1169_v9 }
  0xea   :  { %1049 = vmatprep.subr.bf16.mxu0 %v1105_v3 }
 0x1b7   :  { %v258_v17 = vpop.f32.mrb[2].mxu0 }
 0x1b8   :  { %v263_v18 = vrot.slane %v258_v17, 6  ;;  %v941_v19 = vpop.f32.mrb[3].mxu0 }
 0x1ba   :  { %v265_v20 = vadd.f32 %v263_v18, %v104_v12 }
 0x1bc   :  { %v266_v21 = vmax.f32 %v265_v20, 0.0 }
 0x1be   :  { %v268_v22 = vrot.slane %v266_v21, 2  ;;  %v738_v28 = vsel %vm737_vm4, %v188_v16, %v266_v21 }
 0x1c0   :  { %951 = vmatmul.mubr.msk.f32.vlgmr.msra.gmra.mrb[2].mxu1 %vm113_vm3, %v268_v22 }
 0x1c1   :  { %1045 = vmatpush3.bf16.msra.mxu1 %v1151_v4  ;;  %972 = vmatprep.mubr.msk.f32.mxu1 %vm1106_vm2, %v1107_v10 }
 0x1c2   :  { %1046 = vmatprep.subr.bf16.mxu1 %v1105_v3 }
 0x1c5   :  { %1048 = vmatpush3.bf16.msra.mxu1 %v1169_v9 }
 0x1c6   :  { %1055 = vmatprep.subr.bf16.mxu1 %v1105_v3 }
 0x293   :  { %v337_v23 = vpop.f32.mrb[2].mxu1 }
 0x294   :  { %v342_v24 = vrot.slane %v337_v23, 4  ;;  %v952_v25 = vpop.f32.mrb[3].mxu1 }
 0x296   :  { %v344_v26 = vadd.f32 %v342_v24, %v104_v12 }
 0x298   :  { %v345_v27 = vmax.f32 %v344_v26, 0.0 }
 0x29a   :  { %v347_v29 = vrot.slane %v345_v27, 4  ;;  %v739_v30 = vsel %vm34_vm0, %v738_v28, %v345_v27 }
 0x29c   :  { %962 = vmatmul.mubr.msk.f32.vlgmr.msra.gmra.mrb[4].mxu0 %vm113_vm3, %v347_v29 }
 0x29d   :  { %1051 = vmatpush3.bf16.msra.mxu0 %v1151_v4  ;;  %983 = vmatprep.mubr.msk.f32.mxu0 %vm1106_vm2, %v1107_v10 }
 0x29e   :  { %1052 = vmatprep.subr.bf16.mxu0 %v1105_v3 }
 0x2a1   :  { %1054 = vmatpush3.bf16.msra.mxu0 %v1169_v9 }
 0x2a2   :  { %1061 = vmatprep.subr.bf16.mxu0 %v1105_v3 }
 0x36f   :  { %v416_v31 = vpop.f32.mrb[4].mxu0 }
 0x370   :  { %v421_v32 = vrot.slane %v416_v31, 2  ;;  %v963_v33 = vpop.f32.mrb[5].mxu0 }
 0x372   :  { %v423_v34 = vadd.f32 %v421_v32, %v104_v12 }
 0x374   :  { %v424_v35 = vmax.f32 %v423_v34, 0.0 }
 0x376   :  { %v426_v36 = vrot.slane %v424_v35, 6  ;;  %v741_v37 = vsel %vm740_vm5, %v739_v30, %v424_v35 }
 0x377   :  { %745 = vst.msk [vmem:[#allocation2] sm:$0xff] %vm113_vm3, %v741_v37 }
 0x378   :  { %973 = vmatmul.mubr.msk.f32.vlgmr.msra.gmra.mrb[4].mxu1 %vm113_vm3, %v426_v36 }
 0x379   :  { %1057 = vmatpush3.bf16.msra.mxu1 %v1151_v4  ;;  %994 = vmatprep.mubr.msk.f32.mxu1 %vm1106_vm2, %v1107_v10 }
 0x37a   :  { %1058 = vmatprep.subr.bf16.mxu1 %v1105_v3 }
 0x37d   :  { %1060 = vmatpush3.bf16.msra.mxu1 %v1169_v9 }
 0x37e   :  { %1068 = vmatprep.subr.bf16.mxu1 %v1067_v58 }
 0x44b   :  { %v495_v38 = vpop.f32.mrb[4].mxu1 }
 0x44c   :  { %v499_v39 = vadd.f32 %v1191_v11, %v495_v38  ;;  %v974_v40 = vpop.f32.mrb[5].mxu1 }
 0x44e   :  { %v500_v41 = vmax.f32 %v499_v39, 0.0 }
 0x450   :  { %984 = vmatmul.mubr.msk.f32.vlgmr.msra.gmra.mrb[6].mxu0 %vm113_vm3, %v500_v41 }
 0x451   :  { %1063 = vmatpush3.bf16.msra.mxu0 %v1151_v4  ;;  %1005 = vmatprep.mubr.msk.f32.mxu0 %vm1106_vm2, %v1107_v10 }
 0x452   :  { %1064 = vmatprep.subr.bf16.mxu0 %v1105_v3 }
 0x455   :  { %1066 = vmatpush3.bf16.msra.mxu0 %v1169_v9 }
 0x523   :  { %v570_v42 = vpop.f32.mrb[6].mxu0 }
 0x524   :  { %v575_v43 = vrot.slane %v570_v42, 6  ;;  %v985_v44 = vpop.f32.mrb[7].mxu0 }
 0x526   :  { %v577_v45 = vadd.f32 %v1191_v11, %v575_v43 }
 0x528   :  { %v578_v46 = vmax.f32 %v577_v45, 0.0 }
 0x52a   :  { %v580_v47 = vrot.slane %v578_v46, 2  ;;  %v742_v53 = vsel %vm737_vm4, %v500_v41, %v578_v46 }
 0x52c   :  { %995 = vmatmul.mubr.msk.f32.vlgmr.msra.gmra.mrb[6].mxu1 %vm113_vm3, %v580_v47 }
 0x52d   :  { %1016 = vmatprep.mubr.msk.f32.mxu1 %vm113_vm3, %v741_v37  ;;  %1070 = vmatpush3.bf16.msra.mxu1 %v1067_v58 }
 0x52e   :  { %1072 = vmatprep.subr.bf16.mxu1 %v1071_v61 }
 0x531   :  { %1074 = vmatpush3.bf16.msra.mxu1 %v1071_v61 }
 0x5ff   :  { %v649_v48 = vpop.f32.mrb[6].mxu1 }
 0x600   :  { %v654_v49 = vrot.slane %v649_v48, 4  ;;  %v996_v50 = vpop.f32.mrb[7].mxu1 }
 0x602   :  { %v656_v51 = vadd.f32 %v1191_v11, %v654_v49 }
 0x604   :  { %v657_v52 = vmax.f32 %v656_v51, 0.0 }
 0x606   :  { %v659_v54 = vrot.slane %v657_v52, 4  ;;  %v743_v55 = vsel %vm34_vm0, %v742_v53, %v657_v52 }
 0x608   :  { %1006 = vmatmul.mubr.msk.f32.vlgmr.msra.gmra.mrb[8].mxu0 %vm113_vm3, %v659_v54 }
 0x6db   :  { %v728_v62 = vpop.f32.mrb[8].mxu0 }
 0x6dc   :  { %v733_v63 = vrot.slane %v728_v62, 2  ;;  %v1007_v0 = vpop.f32.mrb[9].mxu0 }
 0x6de   :  { %v735_v1 = vadd.f32 %v1191_v11, %v733_v63 }
 0x6e0   :  { %v736_v2 = vmax.f32 %v735_v1, 0.0 }
 0x6e2   :  { %v744_v3 = vsel %vm740_vm5, %v743_v55, %v736_v2 }
 0x6e3   :  { %746 = vst.msk [vmem:[#allocation2 + $0x8] sm:$0xff] %vm113_vm3, %v744_v3  ;;  %1017 = vmatmul.mubr.msk.f32.vlgmr.msra.gmra.mrb[8].mxu1 %vm113_vm3, %v744_v3 }
 0x6e4   :  { %1092 = shalt.err (!%p1089_p4)
}
 0x6e5   :  { %s1093_s16 = scalar_lea.hbm %s1279_s5, 256 }
 0x6e6   :  { %p1094_p5 = scmp.ne.s32.totalorder %s1279_s5, %s1093_s16  ;;  %p1097_p6 = scmp.lt.u32.totalorder %s1093_s16, %s1279_s5 }
 0x6e8   :  { %p1099_p7 = pnand %p1097_p6, %p1094_p5 }
 0x6ea   :  { %1102 = shalt.err (!%p1099_p7)
}
 0x6eb   :  { %s1109_s21 = smov 128   ;;  %s1110_s22 = smov 8  }
 0x6ec   :  { %847 = dma.vmem_to_hbm [thread:$0]  %s842_s13, 256, %s1279_s5, [#allocation3], %s1109_s21, %s1109_s21, %s1110_s22  }
 0x7b6   :  { %v1018_v4 = vpop.f32.mrb[8].mxu1 }
 0x7b7   :  { %833 = vst.msk [vmem:[%s1278_s4 + $0x8] sm:$0xff] %vm27_vm1, %v1018_v4  ;;  %v823_v5 = vpop.f32.mrb[9].mxu1 }
 0x7b8   :  { %832 = vst.msk [vmem:[%s1278_s4] sm:$0xff] %vm27_vm1, %v823_v5 }
 0x7b9   :  { %1103 = dma.done.wait [#allocation3], 256  }
 0x7ba   :  { %1104 = vsyncadd [#allocation3], 4294967040 }
 0x7bb   :  { %853 = vsyncpa [#allocation3], 1 }

</bundles_post_ra>
